<compile_context>
chip_gen: v7x
topology: tpu7x:2x2x1
jax: 0.10.0
libtpu: 0.0.40
codegen_flags: <defaults>
</compile_context>

<pallas_src>
import functools

import jax
import jax.numpy as jnp
from jax.experimental import pallas as pl
from jax.experimental.pallas import tpu as pltpu


def _round_up(x, m):
    return (x + m - 1) // m * m


def _decoder_mlp_kernel(z_ref, w1_ref, b1_ref, w2_ref, b2_ref, w3_ref, b3_ref,
                        out_ref, *, unroll_latent, epilogue_dtype):
    # ----- Layer 1: Linear(latent -> H1) + ReLU --------------------------------
    z = z_ref[...].astype(jnp.float32)            # [tm, din]
    w1 = w1_ref[...].astype(jnp.float32)          # [din, h1]
    b1 = b1_ref[...].astype(jnp.float32)          # [1, h1]
    if unroll_latent:
        # K = latent_size (2) is a pathological MXU shape (full systolic fill/drain
        # for 2 useful rows). Do the contraction as broadcast FMAs on the VPU.
        h = b1
        for k_idx in range(w1.shape[0]):
            h = h + z[:, k_idx:k_idx + 1] * w1[k_idx:k_idx + 1, :]
    else:
        h = jnp.dot(z, w1, preferred_element_type=jnp.float32) + b1
    h = jnp.maximum(h, 0.0)

    # ----- Layer 2: Linear(H1 -> H2) + ReLU (MXU, f32 accumulate) ---------------
    h = jnp.dot(h.astype(w2_ref.dtype), w2_ref[...],
                preferred_element_type=jnp.float32)
    h = jnp.maximum(h.astype(epilogue_dtype) + b2_ref[...].astype(epilogue_dtype),
                    0.0)

    # ----- Layer 3: Linear(H2 -> Dout), Identity output activation --------------
    y = jnp.dot(h.astype(w3_ref.dtype), w3_ref[...],
                preferred_element_type=jnp.float32)
    y = y.astype(epilogue_dtype) + b3_ref[...].astype(epilogue_dtype)
    out_ref[...] = y.astype(out_ref.dtype)


def prepare_decoder_params(params, compute_dtype=jnp.bfloat16):
    """Casts the large MXU weights (w2, w3) to `compute_dtype` ONCE.

    Do this at init / checkpoint-load time so decoder_forward() does not pay an
    extra convert + f32-weight HBM read on every call.
    """
    p = dict(params)
    p["w2"] = params["w2"].astype(compute_dtype)
    p["w3"] = params["w3"].astype(compute_dtype)
    return p


def decoder_forward(z, params, *, tm=512, compute_dtype=jnp.bfloat16,
                    out_dtype=None, epilogue_dtype=jnp.float32,
                    min_grid_steps=2):
    """Runs the Decoder MLP forward pass as a single fused Pallas kernel.

    z: [B, latent_size] float32
    params: dict with w1 [Din,H1], b1 [1,H1], w2 [H1,H2], b2 [1,H2],
            w3 [H2,Dout], b3 [1,Dout]. Pass params through prepare_decoder_params()
            so w2/w3 are already in `compute_dtype` (f32 escape hatch supported via
            compute_dtype=jnp.float32). Accumulation is always f32.
    out_dtype: output dtype; defaults to z.dtype (f32) for PyTorch parity. The
            kernel is writeback-bound at large B, so out_dtype=jnp.bfloat16 roughly
            halves HBM output traffic (biggest single win on v5e).
    epilogue_dtype: dtype of the bias+ReLU epilogues (f32 default; bf16 is a small
            free win on v6e/v7x which have bf16 VALUs -- keep f32 on v5e).
    min_grid_steps: cap the batch tile so the grid has at least this many steps,
            letting the "parallel" batch axis shard across both v7x TensorCores.
    returns: [B, Dout] in `out_dtype`.
    """
    w1, b1 = params["w1"], params["b1"]
    w2, b2 = params["w2"], params["b2"]
    w3, b3 = params["w3"], params["b3"]

    B, din = z.shape
    h1 = w1.shape[1]
    h2 = w2.shape[1]
    dout = w3.shape[1]
    out_dtype = z.dtype if out_dtype is None else out_dtype

    # Only cast if the caller did not pre-cast (prepare_decoder_params).
    w2c = w2 if w2.dtype == compute_dtype else w2.astype(compute_dtype)
    w3c = w3 if w3.dtype == compute_dtype else w3.astype(compute_dtype)

    # Batch tile: large enough to fill the MXU rows and amortize per-step overhead,
    # never larger than the (padded) batch, always a multiple of 8 sublanes, and
    # capped so the grid has >= min_grid_steps steps (v7x megacore sharding).
    tm_eff = max(8, min(tm, _round_up(B, 8)))
    if min_grid_steps > 1:
        cap = _round_up(max(8, pl.cdiv(B, min_grid_steps)), 8)
        tm_eff = max(8, min(tm_eff, cap))
    grid = (pl.cdiv(B, tm_eff),)   # ragged tails handled by Pallas output masking

    kernel = functools.partial(_decoder_mlp_kernel,
                               unroll_latent=din <= 8,
                               epilogue_dtype=epilogue_dtype)

    full = lambda i: (0, 0)
    out = pl.pallas_call(
        kernel,
        out_shape=jax.ShapeDtypeStruct((B, dout), out_dtype),
        grid=grid,
        in_specs=[
            pl.BlockSpec((tm_eff, din), lambda i: (i, 0)),   # z tile
            pl.BlockSpec((din, h1), full),                   # w1 (f32, VPU path)
            pl.BlockSpec((1, h1), full),                     # b1
            pl.BlockSpec((h1, h2), full),                    # w2 (compute_dtype)
            pl.BlockSpec((1, h2), full),                     # b2
            pl.BlockSpec((h2, dout), full),                  # w3 (compute_dtype)
            pl.BlockSpec((1, dout), full),                   # b3
        ],
        out_specs=pl.BlockSpec((tm_eff, dout), lambda i: (i, 0)),
        compiler_params=pltpu.CompilerParams(
            dimension_semantics=("parallel",)),
    )(z, w1, b1, w2c, b2, w3c, b3)
    return out


def init_decoder_params(key, latent_size=2, layer_sizes=(256, 256),
                        output_dim=784):
    """Deterministic synthetic init matching nn.Linear shapes.

    PyTorch nn.Linear(in, out) stores weight [out, in]; we store the transpose
    [in, out] so the kernel can do z @ W directly.
    """
    sizes = [latent_size] + list(layer_sizes) + [output_dim]
    params = {}
    for j in range(len(sizes) - 1):
        fan_in, fan_out = sizes[j], sizes[j + 1]
        key, kw, kb = jax.random.split(key, 3)
        bound = 1.0 / jnp.sqrt(fan_in)
        w = jax.random.uniform(kw, (fan_in, fan_out), jnp.float32,
                               minval=-bound, maxval=bound)
        b = jax.random.uniform(kb, (1, fan_out), jnp.float32,
                               minval=-bound, maxval=bound)
        params[f"w{j + 1}"] = w
        params[f"b{j + 1}"] = b
    return params


def decoder_forward_ref(z, params, compute_dtype=jnp.bfloat16):
    """Plain-JAX reference mirroring the kernel's dtype policy (f32 params in)."""
    w1 = params["w1"].astype(jnp.float32)
    b1 = params["b1"].astype(jnp.float32)
    w2 = params["w2"].astype(compute_dtype)
    w3 = params["w3"].astype(compute_dtype)
    h = jnp.maximum(z.astype(jnp.float32) @ w1 + b1, 0.0)
    h = jnp.dot(h.astype(compute_dtype), w2,
                preferred_element_type=jnp.float32) + params["b2"].astype(jnp.float32)
    h = jnp.maximum(h, 0.0)
    return jnp.dot(h.astype(compute_dtype), w3,
                   preferred_element_type=jnp.float32) + params["b3"].astype(jnp.float32)


if __name__ == "__main__":
    key = jax.random.PRNGKey(0)
    kp, kz = jax.random.split(key)

    latent_size = 2
    layer_sizes = (256, 256)
    output_dim = 784
    batch = 32

    params = init_decoder_params(kp, latent_size, layer_sizes, output_dim)
    # Pre-cast the big weights to bf16 once (no per-call convert / extra HBM read).
    params_bf16 = prepare_decoder_params(params, jnp.bfloat16)

    z = jax.random.normal(kz, (batch, latent_size), jnp.float32)

    # Default path: bf16 MXU weights, f32 output, >=2 grid steps (megacore-friendly).
    out = jax.block_until_ready(decoder_forward(z, params_bf16))
    ref = decoder_forward_ref(z, params, jnp.bfloat16)
    assert out.shape == (batch, output_dim)
    assert jnp.allclose(out, ref, atol=5e-3, rtol=5e-3), "mismatch vs bf16 reference"

    # Ragged batch (not a multiple of the tile) + bf16 output (halved writeback).
    z2 = jax.random.normal(jax.random.fold_in(kz, 1), (20, latent_size),
                           jnp.float32)
    out2 = jax.block_until_ready(
        decoder_forward(z2, params_bf16, out_dtype=jnp.bfloat16))
    ref2 = decoder_forward_ref(z2, params, jnp.bfloat16)
    assert out2.shape == (20, output_dim)
    assert out2.dtype == jnp.bfloat16
    assert jnp.allclose(out2.astype(jnp.float32), ref2, atol=2e-2, rtol=2e-2), \
        "mismatch (ragged batch / bf16 output)"

    # Full-precision escape hatch (closer to the f32 PyTorch Decoder).
    out3 = jax.block_until_ready(
        decoder_forward(z, params, compute_dtype=jnp.float32))
    ref3 = decoder_forward_ref(z, params, jnp.float32)
    assert jnp.allclose(out3, ref3, atol=1e-2, rtol=1e-2), "mismatch (f32 path)"

    print("KERNEL_OK")
</pallas_src>

<mosaic_0001>
module attributes {stable_mosaic.version = 11 : i64} {
  func.func @_decoder_mlp_kernel(%arg0: i32, %arg1: memref<16x2xf32, #tpu.memory_space<vmem>>, %arg2: memref<2x256xf32, #tpu.memory_space<vmem>>, %arg3: memref<1x256xf32, #tpu.memory_space<vmem>>, %arg4: memref<256x256xbf16, #tpu.memory_space<vmem>>, %arg5: memref<1x256xf32, #tpu.memory_space<vmem>>, %arg6: memref<256x784xbf16, #tpu.memory_space<vmem>>, %arg7: memref<1x784xf32, #tpu.memory_space<vmem>>, %arg8: memref<16x784xf32, #tpu.memory_space<vmem>>) attributes {dimension_semantics = [#tpu.dimension_semantics<parallel>], iteration_bounds = array<i64: 2>, scalar_prefetch = 0 : i64, scratch_operands = 0 : i64, tpu.core_type = #tpu.core_type<tc>, window_params = [{transform_indices = @transform_0, window_bounds = array<i64: 16, 2>}, {pipeline_mode = #tpu.pipeline_mode<synchronous>, transform_indices = @transform_1, window_bounds = array<i64: 2, 256>}, {pipeline_mode = #tpu.pipeline_mode<synchronous>, transform_indices = @transform_2, window_bounds = array<i64: 1, 256>}, {pipeline_mode = #tpu.pipeline_mode<synchronous>, transform_indices = @transform_3, window_bounds = array<i64: 256, 256>}, {pipeline_mode = #tpu.pipeline_mode<synchronous>, transform_indices = @transform_4, window_bounds = array<i64: 1, 256>}, {pipeline_mode = #tpu.pipeline_mode<synchronous>, transform_indices = @transform_5, window_bounds = array<i64: 256, 784>}, {pipeline_mode = #tpu.pipeline_mode<synchronous>, transform_indices = @transform_6, window_bounds = array<i64: 1, 784>}, {transform_indices = @transform_7, window_bounds = array<i64: 16, 784>}]} {
    %c0 = arith.constant 0 : index
    %c0_0 = arith.constant 0 : index
    %0 = vector.load %arg1[%c0, %c0_0] : memref<16x2xf32, #tpu.memory_space<vmem>>, vector<16x2xf32>
    %c0_1 = arith.constant 0 : index
    %c0_2 = arith.constant 0 : index
    %1 = vector.load %arg2[%c0_1, %c0_2] : memref<2x256xf32, #tpu.memory_space<vmem>>, vector<2x256xf32>
    %c0_3 = arith.constant 0 : index
    %c0_4 = arith.constant 0 : index
    %2 = vector.load %arg3[%c0_3, %c0_4] : memref<1x256xf32, #tpu.memory_space<vmem>>, vector<1x256xf32>
    %3 = vector.extract_strided_slice %0 {offsets = [0, 0], sizes = [16, 1], strides = [1, 1]} : vector<16x2xf32> to vector<16x1xf32>
    %4 = vector.extract_strided_slice %1 {offsets = [0, 0], sizes = [1, 256], strides = [1, 1]} : vector<2x256xf32> to vector<1x256xf32>
    %5 = vector.broadcast %3 : vector<16x1xf32> to vector<16x256xf32>
    %6 = vector.broadcast %4 : vector<1x256xf32> to vector<16x256xf32>
    %7 = arith.mulf %5, %6 : vector<16x256xf32>
    %8 = vector.broadcast %2 : vector<1x256xf32> to vector<16x256xf32>
    %9 = arith.addf %8, %7 : vector<16x256xf32>
    %10 = vector.extract_strided_slice %0 {offsets = [0, 1], sizes = [16, 1], strides = [1, 1]} : vector<16x2xf32> to vector<16x1xf32>
    %11 = vector.extract_strided_slice %1 {offsets = [1, 0], sizes = [1, 256], strides = [1, 1]} : vector<2x256xf32> to vector<1x256xf32>
    %12 = vector.broadcast %10 : vector<16x1xf32> to vector<16x256xf32>
    %13 = vector.broadcast %11 : vector<1x256xf32> to vector<16x256xf32>
    %14 = arith.mulf %12, %13 : vector<16x256xf32>
    %15 = arith.addf %9, %14 : vector<16x256xf32>
    %cst = arith.constant 0.000000e+00 : f32
    %16 = vector.broadcast %cst : f32 to vector<16x256xf32>
    %17 = arith.maximumf %15, %16 : vector<16x256xf32>
    %18 = arith.truncf %17 : vector<16x256xf32> to vector<16x256xbf16>
    %c0_5 = arith.constant 0 : index
    %c0_6 = arith.constant 0 : index
    %19 = vector.load %arg4[%c0_5, %c0_6] : memref<256x256xbf16, #tpu.memory_space<vmem>>, vector<256x256xbf16>
    %cst_7 = arith.constant dense<0.000000e+00> : vector<16x256xf32>
    %20 = tpu.matmul %18, %19, %cst_7 {dimension_numbers = #tpu.dot_dimension_numbers<[1], [0], [0], [1], [0, 0, 1, 1], [], []>} : vector<16x256xbf16>, vector<256x256xbf16>, vector<16x256xf32> -> vector<16x256xf32>
    %c0_8 = arith.constant 0 : index
    %c0_9 = arith.constant 0 : index
    %21 = vector.load %arg5[%c0_8, %c0_9] : memref<1x256xf32, #tpu.memory_space<vmem>>, vector<1x256xf32>
    %22 = vector.broadcast %21 : vector<1x256xf32> to vector<16x256xf32>
    %23 = arith.addf %20, %22 : vector<16x256xf32>
    %cst_10 = arith.constant 0.000000e+00 : f32
    %24 = vector.broadcast %cst_10 : f32 to vector<16x256xf32>
    %25 = arith.maximumf %23, %24 : vector<16x256xf32>
    %26 = arith.truncf %25 : vector<16x256xf32> to vector<16x256xbf16>
    %c0_11 = arith.constant 0 : index
    %c0_12 = arith.constant 0 : index
    %27 = vector.load %arg6[%c0_11, %c0_12] : memref<256x784xbf16, #tpu.memory_space<vmem>>, vector<256x784xbf16>
    %cst_13 = arith.constant dense<0.000000e+00> : vector<16x784xf32>
    %28 = tpu.matmul %26, %27, %cst_13 {dimension_numbers = #tpu.dot_dimension_numbers<[1], [0], [0], [1], [0, 0, 1, 1], [], []>} : vector<16x256xbf16>, vector<256x784xbf16>, vector<16x784xf32> -> vector<16x784xf32>
    %c0_14 = arith.constant 0 : index
    %c0_15 = arith.constant 0 : index
    %29 = vector.load %arg7[%c0_14, %c0_15] : memref<1x784xf32, #tpu.memory_space<vmem>>, vector<1x784xf32>
    %30 = vector.broadcast %29 : vector<1x784xf32> to vector<16x784xf32>
    %31 = arith.addf %28, %30 : vector<16x784xf32>
    %c0_16 = arith.constant 0 : index
    %c0_17 = arith.constant 0 : index
    %32 = vector.load %arg8[%c0_16, %c0_17] : memref<16x784xf32, #tpu.memory_space<vmem>>, vector<16x784xf32>
    tpu.vector_store %arg8[%c0_16, %c0_17], %31 {strides = array<i32>} : memref<16x784xf32, #tpu.memory_space<vmem>>, vector<16x784xf32>,
    return
  }
  func.func @transform_0(%arg0: i32) -> (i32, i32) {
    %c0_i32 = arith.constant 0 : i32
    %c0_i32_0 = arith.constant 0 : i32
    return %arg0, %c0_i32 : i32, i32
  }
  func.func @transform_1(%arg0: i32) -> (i32, i32) {
    %c0_i32 = arith.constant 0 : i32
    %c0_i32_0 = arith.constant 0 : i32
    %c0_i32_1 = arith.constant 0 : i32
    return %c0_i32, %c0_i32_0 : i32, i32
  }
  func.func @transform_2(%arg0: i32) -> (i32, i32) {
    %c0_i32 = arith.constant 0 : i32
    %c0_i32_0 = arith.constant 0 : i32
    %c0_i32_1 = arith.constant 0 : i32
    return %c0_i32, %c0_i32_0 : i32, i32
  }
  func.func @transform_3(%arg0: i32) -> (i32, i32) {
    %c0_i32 = arith.constant 0 : i32
    %c0_i32_0 = arith.constant 0 : i32
    %c0_i32_1 = arith.constant 0 : i32
    return %c0_i32, %c0_i32_0 : i32, i32
  }
  func.func @transform_4(%arg0: i32) -> (i32, i32) {
    %c0_i32 = arith.constant 0 : i32
    %c0_i32_0 = arith.constant 0 : i32
    %c0_i32_1 = arith.constant 0 : i32
    return %c0_i32, %c0_i32_0 : i32, i32
  }
  func.func @transform_5(%arg0: i32) -> (i32, i32) {
    %c0_i32 = arith.constant 0 : i32
    %c0_i32_0 = arith.constant 0 : i32
    %c0_i32_1 = arith.constant 0 : i32
    return %c0_i32, %c0_i32_0 : i32, i32
  }
  func.func @transform_6(%arg0: i32) -> (i32, i32) {
    %c0_i32 = arith.constant 0 : i32
    %c0_i32_0 = arith.constant 0 : i32
    %c0_i32_1 = arith.constant 0 : i32
    return %c0_i32, %c0_i32_0 : i32, i32
  }
  func.func @transform_7(%arg0: i32) -> (i32, i32) {
    %c0_i32 = arith.constant 0 : i32
    %c0_i32_0 = arith.constant 0 : i32
    return %arg0, %c0_i32 : i32, i32
  }
}

</mosaic_0001>

<bundles_post_ra>
// kernel: tpu_custom_call.1
= control target key start
LH: loop header
LB: loop body
LE: loop exit
PB: predicated region body
PF: predicated region fallthrough
CT: control target
= control target key end

     0   :  { %12 = vsyncpa [#allocation3], 0  ;;  %s2777_s0 = inlined_call_operand.vmem [shape: f32[32,2], index: 0, kind: input, shape index: {}]   ;;  %s2778_s1 = inlined_call_operand.vmem [shape: f32[2,256], index: 1, kind: input, shape index: {}]   ;;  %s2779_s2 = inlined_call_operand.vmem [shape: f32[1,256], index: 2, kind: input, shape index: {}]   ;;  %s2780_s3 = inlined_call_operand.vmem [shape: bf16[256,256], index: 3, kind: input, shape index: {}]   ;;  %s2781_s4 = inlined_call_operand.vmem [shape: f32[1,256], index: 4, kind: input, shape index: {}]   ;;  %s2782_s5 = inlined_call_operand.vmem [shape: bf16[256,784], index: 5, kind: input, shape index: {}]   ;;  %s2783_s6 = inlined_call_operand.vmem [shape: f32[1,784], index: 6, kind: input, shape index: {}]   ;;  %s2784_s7 = inlined_call_operand.hbm [shape: f32[32,784], index: 7, kind: output, shape index: {}]  }
   0x1   :  { %14 = vsyncpa [#allocation3 + $0x1], 0  ;;  %s2171_s24 = smov 0   ;;  %s2173_s25 = smov 0  }
   0x2   :  { %s2175_s26 = smov 0   ;;  %s2177_s27 = smov 0  }
   0x3 LB: > { %s2192_s28 = sadd.s32 4294967295, %s2124_s27   ;;  %s1629_s29 = sadd.s32 4294967294, %s2124_s27   ;;  %s2124_s27 = sphi %s2177_s27, %s2790_s27   ;;  %s2120_s26 = sphi %s2175_s26, %s2789_s26   ;;  %s2116_s25 = sphi %s2173_s25, %s2788_s25   ;;  %s2112_s24 = sphi %s2171_s24, %s2787_s24  }
   0x4   : > { %s2196_s30 = sadd.s32 1, %s2124_s27   ;;  %s179_s8 = sadd.s32 1, %s2120_s26 }
   0x5   : > { %s176_s9 = ssub.s32 %s2124_s27, %s2196_s30  ;;  %p189_p0 = scmp.ne.s32.totalorder %s2120_s26, %s2116_s25 }
   0x6   : > { %p177_p1 = scmp.eq.s32.totalorder %s176_s9, 0  ;;  %p190_p2 = scmp.eq.s32.totalorder %s2192_s28, 1 }
   0x7   : > { %p195_p3 = scmp.ne.s32.totalorder %s2116_s25, %s2112_s24  ;;  %p196_p4 = scmp.eq.s32.totalorder %s1629_s29, 1 }
   0x8   : > { %s2207_s10 = scalar_select %p177_p1, %s2120_s26, %s179_s8  }
   0x9   : > { %p2209_p5 = por %p190_p2, %p189_p0  ;;  %p2213_p6 = por %p196_p4, %p195_p3 }
   0xa   : > { %p1632_p7 = scmp.ge.s32.totalorder %s2124_s27, 1  ;;  %p241_p8 = scmp.lt.s32.totalorder %s2124_s27, 3 }
   0xc   : > { %p242_p9 = pnand %p1632_p7, %p241_p8 }
   0xd   : > { %s1633_s13 = sshll.u32 (!%p242_p9), %s2192_s28, 1  ;;  %v2126_v0 = vmov (!%p242_p9), 1   ;;  %v2127_v1 = vmov (!%p242_p9), 0   ;;  %v1854_v2 = vld [vmem:[%s2780_s3 + $0x4] ss:$8 sps:$4 sm:$0xff] (!%p242_p9)   ;;  %s270_s18 = sand.u32 (!%p242_p9), 1, %s2116_s25  }
   0xe   : > { %245 = sbr.rel (%p242_p9) target bundleno = 686 (0x2ae), region = 48  ;;  %1852 = vset.pattern.permute.xlu1 (!%p242_p9), %v2126_v0  ;;  %1851 = vset.pattern.permute.xlu0 (!%p242_p9), %v2127_v1  ;;  %p274_p10 = scmp.lt.s32.totalorder (!%p242_p9), %s1633_s13, 3  ;;  %v1856_v3 = vld [vmem:[%s2780_s3] ss:$8 sps:$4 sm:$0xff] (!%p242_p9)   ;;  %v1857_v4 = vld [vmem:[%s2780_s3 + $0x14] ss:$8 sps:$4 sm:$0xff] (!%p242_p9)   ;;  %v296_v1 = vlaneseq (!%p242_p9) }
   0xf   : > { %577 = vmatprep.subr.bf16.mxu0 (!%p242_p9), %v1854_v2  ;;  %v1859_v5 = vld [vmem:[%s2780_s3 + $0x10] ss:$8 sps:$4 sm:$0xff] (!%p242_p9)   ;;  %v1860_v6 = vld [vmem:[%s2780_s3 + $0x24] ss:$8 sps:$4 sm:$0xff] (!%p242_p9)   ;;  %v1862_v9 = vld [vmem:[%s2780_s3 + $0x20] ss:$8 sps:$4 sm:$0xff] (!%p242_p9)  }
  0x10   : > { %578 = vmatpush1.bf16.msra.mxu0 (!%p242_p9), %v1856_v3  ;;  %v1863_v10 = vld [vmem:[%s2780_s3 + $0x34] ss:$8 sps:$4 sm:$0xff] (!%p242_p9)   ;;  %v1865_v11 = vld [vmem:[%s2780_s3 + $0x30] ss:$8 sps:$4 sm:$0xff] (!%p242_p9)   ;;  %v1866_v12 = vld [vmem:[%s2780_s3 + $0x44] ss:$8 sps:$4 sm:$0xff] (!%p242_p9)  }
  0x11   : > { %579 = vmatprep.subr.bf16.mxu0 (!%p242_p9), %v1857_v4  ;;  %v1868_v13 = vld [vmem:[%s2780_s3 + $0x40] ss:$8 sps:$4 sm:$0xff] (!%p242_p9)   ;;  %v1869_v14 = vld [vmem:[%s2780_s3 + $0x54] ss:$8 sps:$4 sm:$0xff] (!%p242_p9)   ;;  %v1871_v15 = vld [vmem:[%s2780_s3 + $0x50] ss:$8 sps:$4 sm:$0xff] (!%p242_p9)  }
  0x12   : > { %v1872_v16 = vld [vmem:[%s2780_s3 + $0x64] ss:$8 sps:$4 sm:$0xff] (!%p242_p9)   ;;  %v1874_v17 = vld [vmem:[%s2780_s3 + $0x60] ss:$8 sps:$4 sm:$0xff] (!%p242_p9)   ;;  %v1875_v18 = vld [vmem:[%s2780_s3 + $0x74] ss:$8 sps:$4 sm:$0xff] (!%p242_p9)  }
  0x13   : > { %v1902_v19 = vld [vmem:[%s2782_s5 + $0x4] ss:$28 sps:$4 sm:$0xff] (!%p242_p9)   ;;  %v1908_v21 = vld [vmem:[%s2782_s5 + $0x3c] ss:$28 sps:$4 sm:$0xff] (!%p242_p9)   ;;  %v1914_v24 = vld [vmem:[%s2782_s5 + $0x74] ss:$28 sps:$4 sm:$0xff] (!%p242_p9)  }
  0x14   : > { %580 = vmatpush1.bf16.msra.mxu0 (!%p242_p9), %v1859_v5  ;;  %v1907_v20 = vld [vmem:[%s2782_s5] ss:$28 sps:$4 sm:$0xff] (!%p242_p9)   ;;  %1367 = vmatprep.subr.bf16.mxu1 (!%p242_p9), %v1902_v19  ;;  %v1913_v22 = vld [vmem:[%s2782_s5 + $0x38] ss:$28 sps:$4 sm:$0xff] (!%p242_p9)   ;;  %v1878_v25 = vld [vmem:[%s2780_s3 + $0x84] ss:$8 sps:$4 sm:$0xff] (!%p242_p9)  }
  0x15   : > { %s2792_s13 = smov (!%p274_p10, %s1633_s13), 3  ;;  %581 = vmatprep.subr.bf16.mxu0 %v1860_v6  ;;  %1368 = vmatpush1.bf16.msra.mxu1 %v1907_v20  ;;  %v1877_v23 = vld [vmem:[%s2780_s3 + $0x70] ss:$8 sps:$4 sm:$0xff]   ;;  %v1880_v27 = vld [vmem:[%s2780_s3 + $0x80] ss:$8 sps:$4 sm:$0xff]   ;;  %v2406_v2 = vshrl.u32 %v296_v1, 7 }
  0x16   : > { %s1634_s20 = sshll.u32 %s2792_s13, 3  ;;  %1369 = vmatprep.subr.bf16.mxu1 %v1908_v21  ;;  %v1919_v26 = vld [vmem:[%s2782_s5 + $0x70] ss:$28 sps:$4 sm:$0xff]   ;;  %v1881_v28 = vld [vmem:[%s2780_s3 + $0x94] ss:$8 sps:$4 sm:$0xff]   ;;  %s1806_s21 = smul.u32 112, %s270_s18 }
  0x17   : > { %s277_s8 = scalar_lea.vmem %s2777_s0, %s1634_s20  ;;  %v1920_v29 = vld [vmem:[%s2782_s5 + $0xac] ss:$28 sps:$4 sm:$0xff]   ;;  %v1883_v31 = vld [vmem:[%s2780_s3 + $0x90] ss:$8 sps:$4 sm:$0xff]   ;;  %v1926_v33 = vld [vmem:[%s2782_s5 + $0xe4] ss:$28 sps:$4 sm:$0xff]  }
  0x18   : > { %v281_v7 = vld [vmem:[%s277_s8] sm:$0xff]  ;;  %v282_v8 = vld [vmem:[%s277_s8 + $0x8] sm:$0xff]  ;;  %582 = vmatpush1.bf16.msra.mxu0 %v1862_v9  ;;  %v1887_v36 = vld [vmem:[%s2780_s3 + $0xb4] ss:$8 sps:$4 sm:$0xff]   ;;  %v2409_v3 = vsub.s32 0, %v2406_v2  ;;  %v302_v4 = vsub.s32 2, %v2406_v2 }
  0x19   : > { %334 = vperm.xlu1 %1852, %v281_v7   ;;  %287 = vperm.xlu0 %1851, %v281_v7   ;;  %v1925_v30 = vld [vmem:[%s2782_s5 + $0xa8] ss:$28 sps:$4 sm:$0xff]   ;;  %v1931_v34 = vld [vmem:[%s2782_s5 + $0xe0] ss:$28 sps:$4 sm:$0xff]   ;;  %v1937_v38 = vld [vmem:[%s2782_s5 + $0x118] ss:$28 sps:$4 sm:$0xff]  }
  0x1a   : > { %583 = vmatprep.subr.bf16.mxu0 %v1863_v10  ;;  %1370 = vmatpush1.bf16.msra.mxu1 %v1913_v22  ;;  %v1884_v32 = vld [vmem:[%s2780_s3 + $0xa4] ss:$8 sps:$4 sm:$0xff]   ;;  %v1886_v35 = vld [vmem:[%s2780_s3 + $0xa0] ss:$8 sps:$4 sm:$0xff]   ;;  %v1932_v37 = vld [vmem:[%s2782_s5 + $0x11c] ss:$28 sps:$4 sm:$0xff]  }
  0x1b   : > { %1371 = vmatprep.subr.bf16.mxu1 %v1914_v24  ;;  %v1889_v39 = vld [vmem:[%s2780_s3 + $0xb0] ss:$8 sps:$4 sm:$0xff]   ;;  %v1890_v40 = vld [vmem:[%s2780_s3 + $0xc4] ss:$8 sps:$4 sm:$0xff]   ;;  %v1892_v43 = vld [vmem:[%s2780_s3 + $0xc0] ss:$8 sps:$4 sm:$0xff]  }
  0x1c   : > { %584 = vmatpush1.bf16.msra.mxu0 %v1865_v11  ;;  %v1938_v41 = vld [vmem:[%s2782_s5 + $0x154] ss:$28 sps:$4 sm:$0xff]   ;;  %v1944_v45 = vld [vmem:[%s2782_s5 + $0x18c] ss:$28 sps:$4 sm:$0xff]   ;;  %v1950_v49 = vld [vmem:[%s2782_s5 + $0x1c4] ss:$28 sps:$4 sm:$0xff]  }
  0x1d   : > { %338 = vperm.xlu1 %1852, %v282_v8   ;;  %292 = vperm.xlu0 %1851, %v282_v8   ;;  %v1943_v42 = vld [vmem:[%s2782_s5 + $0x150] ss:$28 sps:$4 sm:$0xff]   ;;  %v1893_v44 = vld [vmem:[%s2780_s3 + $0xd4] ss:$8 sps:$4 sm:$0xff]   ;;  %v1949_v46 = vld [vmem:[%s2782_s5 + $0x188] ss:$28 sps:$4 sm:$0xff]  }
  0x1e   : > { %585 = vmatprep.subr.bf16.mxu0 %v1866_v12  ;;  %1372 = vmatpush1.bf16.msra.mxu1 %v1919_v26  ;;  %v1895_v47 = vld [vmem:[%s2780_s3 + $0xd0] ss:$8 sps:$4 sm:$0xff]   ;;  %v1896_v48 = vld [vmem:[%s2780_s3 + $0xe4] ss:$8 sps:$4 sm:$0xff]   ;;  %v1955_v50 = vld [vmem:[%s2782_s5 + $0x1c0] ss:$28 sps:$4 sm:$0xff]  }
  0x1f   : > { %1373 = vmatprep.subr.bf16.mxu1 %v1920_v29  ;;  %v1898_v51 = vld [vmem:[%s2780_s3 + $0xe0] ss:$8 sps:$4 sm:$0xff]   ;;  %v1899_v52 = vld [vmem:[%s2780_s3 + $0xf4] ss:$8 sps:$4 sm:$0xff]   ;;  %v1901_v55 = vld [vmem:[%s2780_s3 + $0xf0] ss:$8 sps:$4 sm:$0xff]  }
  0x20   : > { %586 = vmatpush1.bf16.msra.mxu0 %v1868_v13  ;;  %v1956_v53 = vld [vmem:[%s2782_s5 + $0x1fc] ss:$28 sps:$4 sm:$0xff]   ;;  %v1906_v56 = vld [vmem:[%s2782_s5 + $0xc] ss:$28 sps:$4 sm:$0xff]   ;;  %v1962_v57 = vld [vmem:[%s2782_s5 + $0x234] ss:$28 sps:$4 sm:$0xff]  }
  0x21   : > { %1853 = vset.pattern.permute.xlu0 %v2126_v0  ;;  %587 = vmatprep.subr.bf16.mxu0 %v1869_v14  ;;  %v1961_v54 = vld [vmem:[%s2782_s5 + $0x1f8] ss:$28 sps:$4 sm:$0xff]   ;;  %v1967_v58 = vld [vmem:[%s2782_s5 + $0x230] ss:$28 sps:$4 sm:$0xff]   ;;  %v1973_v60 = vld [vmem:[%s2782_s5 + $0x268] ss:$28 sps:$4 sm:$0xff]  }
  0x22   : > { %1374 = vmatpush1.bf16.msra.mxu1 %v1925_v30  ;;  %v1968_v59 = vld [vmem:[%s2782_s5 + $0x26c] ss:$28 sps:$4 sm:$0xff]   ;;  %v1974_v61 = vld [vmem:[%s2782_s5 + $0x2a4] ss:$28 sps:$4 sm:$0xff]   ;;  %v1980_v63 = vld [vmem:[%s2782_s5 + $0x2dc] ss:$28 sps:$4 sm:$0xff]  }
  0x23   : > { %1375 = vmatprep.subr.bf16.mxu1 %v1926_v33  ;;  %v1979_v62 = vld [vmem:[%s2782_s5 + $0x2a0] ss:$28 sps:$4 sm:$0xff]   ;;  %v1985_v0 = vld [vmem:[%s2782_s5 + $0x2d8] ss:$28 sps:$4 sm:$0xff]   ;;  %v2416_v6 = vsub.s32 1, %v2406_v2  ;;  %v347_v7 = vsub.s32 3, %v2406_v2 }
  0x24   : > { %588 = vmatpush1.bf16.msra.mxu0 %v1871_v15  ;;  %v283_v5 = vld [vmem:[%s2778_s1] sm:$0xf]  ;;  %v1964_v1 = vld [vmem:[%s2782_s5 + $0x238] ss:$28 sps:$4 sm:$0xff]   ;;  %s2706_s22 = scalar_lea.vmem [#allocation2], %s1806_s21  ;;  %vm1543_vm0 = vcmask 130048  }
  0x25   : > { %589 = vmatprep.subr.bf16.mxu0 %v1872_v16  ;;  %v299_v8 = vrot.slane %v283_v5, %v2409_v3  ;;  %v303_v9 = vrot.slane %v283_v5, %v302_v4  ;;  %v344_v10 = vrot.slane %v283_v5, %v2416_v6  ;;  %v348_v11 = vrot.slane %v283_v5, %v347_v7  ;;  %v284_v12 = vld [vmem:[%s2779_s2] sm:$0x3]  ;;  %v1972_v5 = vld [vmem:[%s2782_s5 + $0x274] ss:$28 sps:$4 sm:$0xff]   ;;  %s1807_s23 = smul.u32 1792, %s2192_s28  ;;  %s1567_s29 = sshll.u32 %s2706_s22, 4  ;;  %s2729_s29 = int_to_ptr.vmem [resolvable:$true] %s1567_s29 }
  0x26   : > { %1376 = vmatpush1.bf16.msra.mxu1 %v1931_v34  ;;  %v322_v16 = vrot.slane %v284_v12, %v2409_v3  ;;  %v326_v19 = vrot.slane %v284_v12, %v2416_v6  ;;  %v1982_v12 = vld [vmem:[%s2782_s5 + $0x2e0] ss:$28 sps:$4 sm:$0xff]   ;;  %s2736_s28 = scalar_lea.sflag [#allocation3], %s270_s18  ;;  %s2062_s15 = scalar_lea.vmem %s2729_s29, 1792 }
  0x27   : > { %1377 = vmatprep.subr.bf16.mxu1 %v1932_v37  ;;  %v309_v13 = vrot.slane %v299_v8, %v2409_v3  ;;  %v313_v14 = vrot.slane %v303_v9, %v2409_v3  ;;  %v354_v15 = vrot.slane %v344_v10, %v2416_v6  ;;  %v1970_v8 = vld [vmem:[%s2782_s5 + $0x270] ss:$28 sps:$4 sm:$0xff]   ;;  %v1976_v10 = vld [vmem:[%s2782_s5 + $0x2a8] ss:$28 sps:$4 sm:$0xff]   ;;  %s2727_s14 = scalar_lea.hbm %s2784_s7, %s1807_s23  ;;  %p2063_p11 = scmp.ne.s32.totalorder %s2729_s29, %s2062_s15 }
  0x28   : > { %590 = vmatpush1.bf16.msra.mxu0 %v1874_v17  ;;  %v358_v17 = vrot.slane %v348_v11, %v2416_v6  ;;  %v1978_v9 = vld [vmem:[%s2782_s5 + $0x2ac] ss:$28 sps:$4 sm:$0xff]   ;;  %v1984_v11 = vld [vmem:[%s2782_s5 + $0x2e4] ss:$28 sps:$4 sm:$0xff]   ;;  %s2128_s13 = smov [#allocation2]  }
  0x29   : > { %591 = vmatprep.subr.bf16.mxu0 %v1875_v18  ;;  %p2064_p12 = pnand %p2063_p11, %p2209_p5  ;;  %s2066_s16 = sshll.u32 %s2128_s13, 4  ;;  %s2067_s16 = int_to_ptr.vmem [resolvable:$false] %s2066_s16 }
  0x2a   : > { %1378 = vmatpush1.bf16.msra.mxu1 %v1937_v38  ;;  %s2068_s17 = scalar_lea.vmem %s2067_s16, 3584  ;;  %p2069_p0 = scmp.lt.s32.totalorder %s2729_s29, %s2067_s16 }
  0x2b   : > { %1379 = vmatprep.subr.bf16.mxu1 %v1938_v41  ;;  %p2065_p13 = pneg %p2064_p12  ;;  %p2070_p1 = scmp.lt.s32.totalorder %s2068_s17, %s2062_s15 }
  0x2c   : > { %592 = vmatpush1.bf16.msra.mxu0 %v1877_v23 }
  0x2d   : > { %593 = vmatprep.subr.bf16.mxu0 %v1878_v25  ;;  %p2071_p2 = por %p2070_p1, %p2069_p0 }
  0x2e   : > { %1380 = vmatpush1.bf16.msra.mxu1 %v1943_v42 }
  0x2f   : > { %1381 = vmatprep.subr.bf16.mxu1 %v1944_v45  ;;  %v1904_v45 = vld [vmem:[%s2782_s5 + $0x8] ss:$28 sps:$4 sm:$0xff]   ;;  %p2072_p3 = pnand %p2071_p2, %p2065_p13 }
  0x30   : > { %594 = vmatpush1.bf16.msra.mxu0 %v1880_v27 }
  0x31   : > { %595 = vmatprep.subr.bf16.mxu0 %v1881_v28 }
  0x32   : > { %1382 = vmatpush1.bf16.msra.mxu1 %v1949_v46  ;;  %v1912_v46 = vld [vmem:[%s2782_s5 + $0x44] ss:$28 sps:$4 sm:$0xff]  }
  0x33   : > { %1383 = vmatprep.subr.bf16.mxu1 %v1950_v49  ;;  %v1916_v49 = vld [vmem:[%s2782_s5 + $0x78] ss:$28 sps:$4 sm:$0xff]  }
  0x34   : > { %596 = vmatpush1.bf16.msra.mxu0 %v1883_v31 }
  0x35   : > { %597 = vmatprep.subr.bf16.mxu0 %v1884_v32 }
  0x36   : > { %1384 = vmatpush1.bf16.msra.mxu1 %v1955_v50  ;;  %v1924_v50 = vld [vmem:[%s2782_s5 + $0xb4] ss:$28 sps:$4 sm:$0xff]  }
  0x37   : > { %1385 = vmatprep.subr.bf16.mxu1 %v1956_v53  ;;  %v1928_v53 = vld [vmem:[%s2782_s5 + $0xe8] ss:$28 sps:$4 sm:$0xff]  }
  0x38   : > { %598 = vmatpush1.bf16.msra.mxu0 %v1886_v35 }
  0x39   : > { %599 = vmatprep.subr.bf16.mxu0 %v1887_v36 }
  0x3a   : > { %1386 = vmatpush1.bf16.msra.mxu1 %v1961_v54  ;;  %v1936_v54 = vld [vmem:[%s2782_s5 + $0x124] ss:$28 sps:$4 sm:$0xff]  }
  0x3b   : > { %1387 = vmatprep.subr.bf16.mxu1 %v1962_v57  ;;  %v1940_v57 = vld [vmem:[%s2782_s5 + $0x158] ss:$28 sps:$4 sm:$0xff]  }
  0x3c   : > { %600 = vmatpush1.bf16.msra.mxu0 %v1889_v39 }
  0x3d   : > { %601 = vmatprep.subr.bf16.mxu0 %v1890_v40 }
  0x3e   : > { %1388 = vmatpush1.bf16.msra.mxu1 %v1967_v58  ;;  %v1948_v58 = vld [vmem:[%s2782_s5 + $0x194] ss:$28 sps:$4 sm:$0xff]  }
  0x3f   : > { %1389 = vmatprep.subr.bf16.mxu1 %v1968_v59  ;;  %v1946_v59 = vld [vmem:[%s2782_s5 + $0x190] ss:$28 sps:$4 sm:$0xff]  }
  0x40   : > { %602 = vmatpush1.bf16.msra.mxu0 %v1892_v43 }
  0x41   : > { %603 = vmatprep.subr.bf16.mxu0 %v1893_v44 }
  0x42   : > { %1390 = vmatpush1.bf16.msra.mxu1 %v1973_v60  ;;  %v1954_v60 = vld [vmem:[%s2782_s5 + $0x1cc] ss:$28 sps:$4 sm:$0xff]  }
  0x43   : > { %1391 = vmatprep.subr.bf16.mxu1 %v1974_v61  ;;  %v1952_v61 = vld [vmem:[%s2782_s5 + $0x1c8] ss:$28 sps:$4 sm:$0xff]  }
  0x44   : > { %604 = vmatpush1.bf16.msra.mxu0 %v1895_v47  ;;  %v1910_v47 = vld [vmem:[%s2782_s5 + $0x40] ss:$28 sps:$4 sm:$0xff]  }
  0x45   : > { %605 = vmatprep.subr.bf16.mxu0 %v1896_v48  ;;  %v1918_v48 = vld [vmem:[%s2782_s5 + $0x7c] ss:$28 sps:$4 sm:$0xff]  }
  0x46   : > { %1392 = vmatpush1.bf16.msra.mxu1 %v1979_v62  ;;  %v1960_v62 = vld [vmem:[%s2782_s5 + $0x204] ss:$28 sps:$4 sm:$0xff]  }
  0x47   : > { %1393 = vmatprep.subr.bf16.mxu1 %v1980_v63  ;;  %v1958_v63 = vld [vmem:[%s2782_s5 + $0x200] ss:$28 sps:$4 sm:$0xff]  }
  0x48   : > { %606 = vmatpush1.bf16.msra.mxu0 %v1898_v51  ;;  %v1922_v51 = vld [vmem:[%s2782_s5 + $0xb0] ss:$28 sps:$4 sm:$0xff]  }
  0x49   : > { %607 = vmatprep.subr.bf16.mxu0 %v1899_v52  ;;  %v1930_v52 = vld [vmem:[%s2782_s5 + $0xec] ss:$28 sps:$4 sm:$0xff]  }
  0x4a   : > { %1394 = vmatpush1.bf16.msra.mxu1 %v1985_v0  ;;  %v1966_v0 = vld [vmem:[%s2782_s5 + $0x23c] ss:$28 sps:$4 sm:$0xff]  }
  0x4c   : > { %608 = vmatpush1.bf16.msra.mxu0 %v1901_v55  ;;  %v1934_v55 = vld [vmem:[%s2782_s5 + $0x120] ss:$28 sps:$4 sm:$0xff]  }
  0x4d   : > { %1410 = vmatprep.subr.bf16.mxu0 %v1906_v56  ;;  %v1942_v56 = vld [vmem:[%s2782_s5 + $0x15c] ss:$28 sps:$4 sm:$0xff]  }
  0x98   : > { %v335_v18 = vpop.permute.xlu1 %334  ;;  %v288_v20 = vpop.permute.xlu0 %287 }
  0x99   : > { %v314_v21 = vmul.f32 %v309_v13, %v288_v20  ;;  %v315_v22 = vmul.f32 %v313_v14, %v288_v20  ;;  %v359_v23 = vmul.f32 %v354_v15, %v335_v18  ;;  %v360_v25 = vmul.f32 %v358_v17, %v335_v18  ;;  %v1996_v18 = vld [vmem:[%s2782_s5 + $0x354] ss:$28 sps:$4 sm:$0xff]   ;;  %v1997_v20 = vld [vmem:[%s2782_s5 + $0x348] ss:$28 sps:$4 sm:$0xff]  }
  0x9b   : > { %v329_v24 = vadd.f32 %v322_v16, %v314_v21  ;;  %v330_v26 = vadd.f32 %v326_v19, %v315_v22  ;;  %v2000_v21 = vld [vmem:[%s2782_s5 + $0x14] ss:$28 sps:$4 sm:$0xff]  }
  0x9c   : > { %v339_v27 = vpop.permute.xlu1 %338  ;;  %v293_v28 = vpop.permute.xlu0 %292  ;;  %v2001_v22 = vld [vmem:[%s2782_s5 + $0x1d8] ss:$28 sps:$4 sm:$0xff]  }
  0x9d   : > { %v316_v29 = vmul.f32 %v309_v13, %v293_v28  ;;  %v317_v30 = vmul.f32 %v313_v14, %v293_v28  ;;  %v363_v31 = vadd.f32 %v359_v23, %v329_v24  ;;  %v361_v32 = vmul.f32 %v354_v15, %v339_v27  ;;  %v1986_v13 = vld [vmem:[%s2782_s5 + $0x314] ss:$28 sps:$4 sm:$0xff]   ;;  %v1990_v14 = vld [vmem:[%s2782_s5 + $0x31c] ss:$28 sps:$4 sm:$0xff]   ;;  %v405_v23 = vld [vmem:[%s2781_s4] sm:$0x3] }
  0x9e   : > { %v362_v34 = vmul.f32 %v358_v17, %v339_v27  ;;  %v364_v36 = vadd.f32 %v360_v25, %v330_v26  ;;  %v1988_v15 = vld [vmem:[%s2782_s5 + $0x318] ss:$28 sps:$4 sm:$0xff]   ;;  %1395 = vmatprep.subr.bf16.mxu1 %v1986_v13  ;;  %v1992_v17 = vld [vmem:[%s2782_s5 + $0x34c] ss:$28 sps:$4 sm:$0xff]   ;;  %v410_v24 = vrot.slane %v405_v23, %v2409_v3  ;;  %v414_v25 = vrot.slane %v405_v23, %v2416_v6  ;;  %v2058_v23 = vld [vmem:[%s2782_s5 + $0x324] ss:$28 sps:$4 sm:$0xff]  }
  0x9f   : > { %v331_v33 = vadd.f32 %v322_v16, %v316_v29  ;;  %v332_v35 = vadd.f32 %v326_v19, %v317_v30  ;;  %v367_v40 = vmax.f32 %v363_v31, 0.0  ;;  %v1991_v16 = vld [vmem:[%s2782_s5 + $0x310] ss:$28 sps:$4 sm:$0xff]  }
  0xa0   : > { %v368_v41 = vmax.f32 %v364_v36, 0.0  ;;  %1396 = vmatpush1.bf16.msra.mxu1 %v1991_v16  ;;  %v1994_v19 = vld [vmem:[%s2782_s5 + $0x350] ss:$28 sps:$4 sm:$0xff]   ;;  %v2044_v16 = vld [vmem:[%s2782_s5 + $0x240] ss:$28 sps:$4 sm:$0xff]  }
  0xa1   : > { %v365_v37 = vadd.f32 %v361_v32, %v331_v33  ;;  %v366_v38 = vadd.f32 %v362_v34, %v332_v35  ;;  %1397 = vmatprep.subr.bf16.mxu1 %v1992_v17  ;;  %v2043_v13 = vld [vmem:[%s2782_s5 + $0x20c] ss:$28 sps:$4 sm:$0xff]   ;;  %v2049_v17 = vld [vmem:[%s2782_s5 + $0x27c] ss:$28 sps:$4 sm:$0xff]  }
  0xa3   : > { %v369_v39 = vmax.f32 %v365_v37, 0.0  ;;  %v370_v42 = vmax.f32 %v366_v38, 0.0 }
  0xa4   : > { %1398 = vmatpush1.bf16.msra.mxu1 %v1997_v20  ;;  %v2050_v20 = vld [vmem:[%s2782_s5 + $0x2b0] ss:$28 sps:$4 sm:$0xff]  }
  0xa5   : > { %v371_v43 = vpack.c.bf16 %v369_v39, %v367_v40  ;;  %v372_v44 = vpack.c.bf16 %v370_v42, %v368_v41  ;;  %1453 = vmatprep.subr.bf16.mxu1 %v2000_v21  ;;  %v1998_v40 = vld [vmem:[%s2782_s5 + $0x10] ss:$28 sps:$4 sm:$0xff]   ;;  %v2002_v41 = vld [vmem:[%s2782_s5 + $0x18] ss:$28 sps:$4 sm:$0xff]  }
  0xa6   : > { %v2005_v42 = vld [vmem:[%s2782_s5 + $0x4c] ss:$28 sps:$4 sm:$0xff]  }
  0xa7   : > { %609 = vmatprep.mubr.bf16.mxu0 %v372_v44  ;;  %v2003_v44 = vld [vmem:[%s2782_s5 + $0x48] ss:$28 sps:$4 sm:$0xff]  }
  0xa8   : > { %610 = vmatmul.mubr.bf16.vlgmr.msra.gmra.mrb[0].mxu0 %v371_v43  ;;  %v2006_v43 = vld [vmem:[%s2782_s5 + $0x210] ss:$28 sps:$4 sm:$0xff]  }
  0xa9   : > { %1411 = vmatpush1.bf16.msra.mxu0 %v1904_v45  ;;  %v2007_v45 = vld [vmem:[%s2782_s5 + $0x50] ss:$28 sps:$4 sm:$0xff]  }
  0xaa   : > { %1412 = vmatprep.subr.bf16.mxu0 %v1912_v46  ;;  %v2010_v46 = vld [vmem:[%s2782_s5 + $0x84] ss:$28 sps:$4 sm:$0xff]   ;;  %v2055_v21 = vld [vmem:[%s2782_s5 + $0x2ec] ss:$28 sps:$4 sm:$0xff]  }
  0xad   : > { %1413 = vmatpush1.bf16.msra.mxu0 %v1910_v47  ;;  %v2011_v47 = vld [vmem:[%s2782_s5 + $0x248] ss:$28 sps:$4 sm:$0xff]  }
  0xae   : > { %1414 = vmatprep.subr.bf16.mxu0 %v1918_v48  ;;  %v2008_v48 = vld [vmem:[%s2782_s5 + $0x80] ss:$28 sps:$4 sm:$0xff]  }
  0xb1   : > { %1415 = vmatpush1.bf16.msra.mxu0 %v1916_v49  ;;  %v2012_v49 = vld [vmem:[%s2782_s5 + $0x88] ss:$28 sps:$4 sm:$0xff]  }
  0xb2   : > { %1416 = vmatprep.subr.bf16.mxu0 %v1924_v50  ;;  %v2015_v50 = vld [vmem:[%s2782_s5 + $0xbc] ss:$28 sps:$4 sm:$0xff]  }
  0xb5   : > { %1417 = vmatpush1.bf16.msra.mxu0 %v1922_v51  ;;  %v2016_v51 = vld [vmem:[%s2782_s5 + $0x280] ss:$28 sps:$4 sm:$0xff]  }
  0xb6   : > { %1418 = vmatprep.subr.bf16.mxu0 %v1930_v52  ;;  %v2013_v52 = vld [vmem:[%s2782_s5 + $0xb8] ss:$28 sps:$4 sm:$0xff]  }
  0xb9   : > { %1419 = vmatpush1.bf16.msra.mxu0 %v1928_v53  ;;  %v2017_v53 = vld [vmem:[%s2782_s5 + $0xc0] ss:$28 sps:$4 sm:$0xff]  }
  0xba   : > { %1420 = vmatprep.subr.bf16.mxu0 %v1936_v54  ;;  %v2020_v54 = vld [vmem:[%s2782_s5 + $0xf4] ss:$28 sps:$4 sm:$0xff]  }
  0xbd   : > { %1421 = vmatpush1.bf16.msra.mxu0 %v1934_v55  ;;  %v2021_v55 = vld [vmem:[%s2782_s5 + $0x2b8] ss:$28 sps:$4 sm:$0xff]  }
  0xbe   : > { %1422 = vmatprep.subr.bf16.mxu0 %v1942_v56  ;;  %v2018_v56 = vld [vmem:[%s2782_s5 + $0xf0] ss:$28 sps:$4 sm:$0xff]  }
  0xc1   : > { %1423 = vmatpush1.bf16.msra.mxu0 %v1940_v57  ;;  %v2022_v57 = vld [vmem:[%s2782_s5 + $0xf8] ss:$28 sps:$4 sm:$0xff]  }
  0xc2   : > { %1424 = vmatprep.subr.bf16.mxu0 %v1948_v58  ;;  %v2025_v58 = vld [vmem:[%s2782_s5 + $0x12c] ss:$28 sps:$4 sm:$0xff]  }
  0xc5   : > { %1425 = vmatpush1.bf16.msra.mxu0 %v1946_v59  ;;  %v2026_v59 = vld [vmem:[%s2782_s5 + $0x2f0] ss:$28 sps:$4 sm:$0xff]  }
  0xc6   : > { %1426 = vmatprep.subr.bf16.mxu0 %v1954_v60  ;;  %v2023_v60 = vld [vmem:[%s2782_s5 + $0x128] ss:$28 sps:$4 sm:$0xff]  }
  0xc9   : > { %1427 = vmatpush1.bf16.msra.mxu0 %v1952_v61  ;;  %v2027_v61 = vld [vmem:[%s2782_s5 + $0x130] ss:$28 sps:$4 sm:$0xff]  }
  0xca   : > { %1428 = vmatprep.subr.bf16.mxu0 %v1960_v62  ;;  %v2030_v62 = vld [vmem:[%s2782_s5 + $0x164] ss:$28 sps:$4 sm:$0xff]  }
  0xcd   : > { %1429 = vmatpush1.bf16.msra.mxu0 %v1958_v63  ;;  %v2031_v63 = vld [vmem:[%s2782_s5 + $0x328] ss:$28 sps:$4 sm:$0xff]  }
  0xce   : > { %1430 = vmatprep.subr.bf16.mxu0 %v1966_v0  ;;  %v2028_v0 = vld [vmem:[%s2782_s5 + $0x160] ss:$28 sps:$4 sm:$0xff]  }
  0xd1   : > { %1431 = vmatpush1.bf16.msra.mxu0 %v1964_v1  ;;  %v2032_v1 = vld [vmem:[%s2782_s5 + $0x168] ss:$28 sps:$4 sm:$0xff]  }
  0xd2   : > { %1432 = vmatprep.subr.bf16.mxu0 %v1972_v5  ;;  %v2035_v5 = vld [vmem:[%s2782_s5 + $0x19c] ss:$28 sps:$4 sm:$0xff]  }
  0xd5   : > { %1433 = vmatpush1.bf16.msra.mxu0 %v1970_v8  ;;  %v2036_v8 = vld [vmem:[%s2782_s5 + $0x360] ss:$28 sps:$4 sm:$0xff]  }
  0xd6   : > { %1434 = vmatprep.subr.bf16.mxu0 %v1978_v9  ;;  %v2033_v9 = vld [vmem:[%s2782_s5 + $0x198] ss:$28 sps:$4 sm:$0xff]  }
  0xd9   : > { %1435 = vmatpush1.bf16.msra.mxu0 %v1976_v10  ;;  %v2037_v10 = vld [vmem:[%s2782_s5 + $0x1a0] ss:$28 sps:$4 sm:$0xff]  }
  0xda   : > { %1436 = vmatprep.subr.bf16.mxu0 %v1984_v11  ;;  %v2040_v11 = vld [vmem:[%s2782_s5 + $0x1d4] ss:$28 sps:$4 sm:$0xff]  }
  0xdd   : > { %1437 = vmatpush1.bf16.msra.mxu0 %v1982_v12  ;;  %v2038_v12 = vld [vmem:[%s2782_s5 + $0x1d0] ss:$28 sps:$4 sm:$0xff]  }
  0xde   : > { %1438 = vmatprep.subr.bf16.mxu0 %v1990_v14  ;;  %v2041_v14 = vld [vmem:[%s2782_s5 + $0x208] ss:$28 sps:$4 sm:$0xff]  }
  0xe1   : > { %1439 = vmatpush1.bf16.msra.mxu0 %v1988_v15  ;;  %v2046_v15 = vld [vmem:[%s2782_s5 + $0x244] ss:$28 sps:$4 sm:$0xff]  }
  0xe2   : > { %1440 = vmatprep.subr.bf16.mxu0 %v1996_v18  ;;  %v2047_v18 = vld [vmem:[%s2782_s5 + $0x278] ss:$28 sps:$4 sm:$0xff]  }
  0xe5   : > { %1441 = vmatpush1.bf16.msra.mxu0 %v1994_v19  ;;  %v2052_v19 = vld [vmem:[%s2782_s5 + $0x2b4] ss:$28 sps:$4 sm:$0xff]  }
  0xe6   : > { %1784 = vmatprep.subr.bf16.mxu0 %v2001_v22  ;;  %v2053_v22 = vld [vmem:[%s2782_s5 + $0x2e8] ss:$28 sps:$4 sm:$0xff]  }
 0x17b   : > { %v611_v26 = vpop.f32.mrb[0].mxu0 }
 0x17c   : > { %v612_v27 = vadd.f32 %v611_v26, %v410_v24  ;;  %v613_v28 = vpop.f32.mrb[1].mxu0  ;;  %v2059_v26 = vld [vmem:[%s2782_s5 + $0x358] ss:$28 sps:$4 sm:$0xff]  }
 0x17d   : > { %v614_v29 = vadd.f32 %v613_v28, %v414_v25  ;;  %v615_v30 = vpop.f32.mrb[2].mxu0 }
 0x17e   : > { %v616_v31 = vadd.f32 %v615_v30, %v410_v24  ;;  %v617_v32 = vpop.f32.mrb[3].mxu0  ;;  %v620_v34 = vmax.f32 %v612_v27, 0.0  ;;  %v2056_v24 = vld [vmem:[%s2782_s5 + $0x320] ss:$28 sps:$4 sm:$0xff]  }
 0x17f   : > { %v618_v33 = vadd.f32 %v617_v32, %v414_v25  ;;  %v621_v36 = vmax.f32 %v614_v29, 0.0  ;;  %v2061_v25 = vld [vmem:[%s2782_s5 + $0x35c] ss:$28 sps:$4 sm:$0xff]   ;;  %v754_v27 = vld [vmem:[%s2783_s6] sm:$0x7f] }
 0x180   : > { %v622_v35 = vmax.f32 %v616_v31, 0.0  ;;  %v759_v28 = vrot.slane %v754_v27, %v2409_v3  ;;  %v767_v29 = vrot.slane %v754_v27, %v302_v4  ;;  %v763_v30 = vrot.slane %v754_v27, %v2416_v6 }
 0x181   : > { %v623_v37 = vmax.f32 %v618_v33, 0.0  ;;  %v771_v31 = vrot.slane %v754_v27, %v347_v7 }
 0x182   : > { %v2550_v38 = vpack.c.bf16 %v622_v35, %v620_v34 }
 0x183   : > { %v625_v39 = vpack.c.bf16 %v623_v37, %v621_v36 }
 0x185   : > { %1399 = vmatprep.mubr.bf16.mxu1 %v625_v39  ;;  %1442 = vmatprep.mubr.bf16.mxu0 %v625_v39 }
 0x186   : > { %1400 = vmatmul.mubr.bf16.vlgmr.msra.gmra.mrb[0].mxu1 %v2550_v38  ;;  %1443 = vmatmul.mubr.bf16.vlgmr.msra.gmra.mrb[4].mxu0 %v2550_v38 }
 0x187   : > { %1454 = vmatpush1.bf16.msra.mxu1 %v1998_v40  ;;  %1785 = vmatpush3.bf16.msra.mxu0 %v2002_v41 }
 0x188   : > { %1485 = vmatprep.mubr.bf16.mxu1 %v625_v39  ;;  %1528 = vmatprep.mubr.bf16.mxu0 %v625_v39 }
 0x189   : > { %1455 = vmatprep.subr.bf16.mxu1 %v2005_v42  ;;  %1786 = vmatprep.subr.bf16.mxu0 %v2006_v43 }
 0x18b   : > { %1456 = vmatpush1.bf16.msra.mxu1 %v2003_v44  ;;  %1787 = vmatpush3.bf16.msra.mxu0 %v2007_v45  ;;  %v782_v44 = vsub.s32 6, %v2406_v2 }
 0x18c   : > { %1457 = vmatprep.subr.bf16.mxu1 %v2010_v46  ;;  %1788 = vmatprep.subr.bf16.mxu0 %v2011_v47 }
 0x18d   : > { %v783_v46 = vrot.slane %v754_v27, %v782_v44 }
 0x18f   : > { %1458 = vmatpush1.bf16.msra.mxu1 %v2008_v48  ;;  %1789 = vmatpush3.bf16.msra.mxu0 %v2012_v49 }
 0x190   : > { %1459 = vmatprep.subr.bf16.mxu1 %v2015_v50  ;;  %1790 = vmatprep.subr.bf16.mxu0 %v2016_v51 }
 0x193   : > { %1460 = vmatpush1.bf16.msra.mxu1 %v2013_v52  ;;  %1791 = vmatpush3.bf16.msra.mxu0 %v2017_v53 }
 0x194   : > { %1461 = vmatprep.subr.bf16.mxu1 %v2020_v54  ;;  %1792 = vmatprep.subr.bf16.mxu0 %v2021_v55  ;;  %v774_v54 = vsub.s32 4, %v2406_v2  ;;  %v778_v55 = vsub.s32 5, %v2406_v2 }
 0x197   : > { %1462 = vmatpush1.bf16.msra.mxu1 %v2018_v56  ;;  %1793 = vmatpush3.bf16.msra.mxu0 %v2022_v57  ;;  %v775_v56 = vrot.slane %v754_v27, %v774_v54  ;;  %v779_v57 = vrot.slane %v754_v27, %v778_v55 }
 0x198   : > { %1463 = vmatprep.subr.bf16.mxu1 %v2025_v58  ;;  %1794 = vmatprep.subr.bf16.mxu0 %v2026_v59 }
 0x19b   : > { %1464 = vmatpush1.bf16.msra.mxu1 %v2023_v60  ;;  %1795 = vmatpush3.bf16.msra.mxu0 %v2027_v61 }
 0x19c   : > { %1465 = vmatprep.subr.bf16.mxu1 %v2030_v62  ;;  %1796 = vmatprep.subr.bf16.mxu0 %v2031_v63 }
 0x19f   : > { %1466 = vmatpush1.bf16.msra.mxu1 %v2028_v0  ;;  %1797 = vmatpush3.bf16.msra.mxu0 %v2032_v1 }
 0x1a0   : > { %1467 = vmatprep.subr.bf16.mxu1 %v2035_v5  ;;  %1798 = vmatprep.subr.bf16.mxu0 %v2036_v8 }
 0x1a3   : > { %1468 = vmatpush1.bf16.msra.mxu1 %v2033_v9  ;;  %1799 = vmatpush3.bf16.msra.mxu0 %v2037_v10 }
 0x1a4   : > { %1469 = vmatprep.subr.bf16.mxu1 %v2040_v11 }
 0x1a6   : > { %1529 = vmatmul.mubr.bf16.vlgmr.msra.gmra.mrb[8].mxu0 %v2550_v38 }
 0x1a7   : > { %1470 = vmatpush1.bf16.msra.mxu1 %v2038_v12 }
 0x1a8   : > { %1471 = vmatprep.subr.bf16.mxu1 %v2043_v13 }
 0x1ab   : > { %1472 = vmatpush1.bf16.msra.mxu1 %v2041_v14 }
 0x1ac   : > { %1473 = vmatprep.subr.bf16.mxu1 %v2046_v15 }
 0x1af   : > { %1474 = vmatpush1.bf16.msra.mxu1 %v2044_v16 }
 0x1b0   : > { %1475 = vmatprep.subr.bf16.mxu1 %v2049_v17 }
 0x1b3   : > { %1476 = vmatpush1.bf16.msra.mxu1 %v2047_v18 }
 0x1b4   : > { %1477 = vmatprep.subr.bf16.mxu1 %v2052_v19 }
 0x1b7   : > { %1478 = vmatpush1.bf16.msra.mxu1 %v2050_v20 }
 0x1b8   : > { %1479 = vmatprep.subr.bf16.mxu1 %v2055_v21 }
 0x1bb   : > { %1480 = vmatpush1.bf16.msra.mxu1 %v2053_v22 }
 0x1bc   : > { %1481 = vmatprep.subr.bf16.mxu1 %v2058_v23 }
 0x1bf   : > { %1482 = vmatpush1.bf16.msra.mxu1 %v2056_v24 }
 0x1c0   : > { %1483 = vmatprep.subr.bf16.mxu1 %v2061_v25 }
 0x1c3   : > { %1484 = vmatpush1.bf16.msra.mxu1 %v2059_v26 }
 0x1c6   : > { %1486 = vmatmul.mubr.bf16.vlgmr.msra.gmra.mrb[4].mxu1 %v2550_v38 }
 0x259   : > { %v1401_v32 = vpop.f32.mrb[0].mxu1  ;;  %v1444_v33 = vpop.f32.mrb[4].mxu0 }
 0x25a   : > { %v1402_v34 = vadd.f32 %v1401_v32, %v759_v28  ;;  %v1445_v35 = vadd.f32 %v1444_v33, %v767_v29  ;;  %v1403_v36 = vpop.f32.mrb[1].mxu1  ;;  %v1446_v37 = vpop.f32.mrb[5].mxu0 }
 0x25b   : > { %v1404_v38 = vadd.f32 %v1403_v36, %v763_v30  ;;  %v1447_v39 = vadd.f32 %v1446_v37, %v771_v31  ;;  %v1405_v40 = vpop.f32.mrb[2].mxu1  ;;  %v1448_v41 = vpop.f32.mrb[6].mxu0 }
 0x25c   : > { %1537 = vst [vmem:[%s2706_s22] sm:$0xff] %v1402_v34  ;;  %1539 = vst [vmem:[%s2706_s22 + $0x10] sm:$0xff] %v1445_v35  ;;  %v1406_v3 = vadd.f32 %v1405_v40, %v759_v28  ;;  %v1449_v4 = vadd.f32 %v1448_v41, %v767_v29  ;;  %v1407_v6 = vpop.f32.mrb[3].mxu1  ;;  %v1450_v7 = vpop.f32.mrb[7].mxu0 }
 0x25d   : > { %1538 = vst [vmem:[%s2706_s22 + $0x8] sm:$0xff] %v1404_v38  ;;  %1540 = vst [vmem:[%s2706_s22 + $0x18] sm:$0xff] %v1447_v39  ;;  %v1408_v42 = vadd.f32 %v1407_v6, %v763_v30  ;;  %v1451_v43 = vadd.f32 %v1450_v7, %v771_v31 }
 0x25e   : > { %1545 = vst [vmem:[%s2706_s22 + $0x38] sm:$0xff] %v1406_v3  ;;  %1547 = vst [vmem:[%s2706_s22 + $0x48] sm:$0xff] %v1449_v4 }
 0x25f   : > { %1546 = vst [vmem:[%s2706_s22 + $0x40] sm:$0xff] %v1408_v42  ;;  %1548 = vst [vmem:[%s2706_s22 + $0x50] sm:$0xff] %v1451_v43 }
 0x279   : > { %v1800_v45 = vpop.f32.mrb[8].mxu0 }
 0x27a   : > { %v1801_v47 = vpop.f32.mrb[9].mxu0 }
 0x27b   : > { %v1802_v48 = vadd.f32 %v1801_v47, %v1800_v45  ;;  %v1803_v49 = vpop.f32.mrb[10].mxu0 }
 0x27c   : > { %v1804_v50 = vpop.f32.mrb[11].mxu0 }
 0x27d   : > { %v1531_v51 = vadd.f32 %v1802_v48, %v783_v46  ;;  %v1805_v52 = vadd.f32 %v1804_v50, %v1803_v49 }
 0x27f   : > { %1544 = vst.msk [vmem:[%s2706_s22 + $0x30] sm:$0xff] %vm1543_vm0, %v1531_v51  ;;  %v1534_v53 = vadd.f32 %v1805_v52, %v783_v46 }
 0x281   : > { %1551 = vst.msk [vmem:[%s2706_s22 + $0x68] sm:$0xff] %vm1543_vm0, %v1534_v53 }
 0x299   : > { %v1487_v58 = vpop.f32.mrb[4].mxu1 }
 0x29a   : > { %v1488_v59 = vadd.f32 %v1487_v58, %v775_v56  ;;  %v1489_v60 = vpop.f32.mrb[5].mxu1 }
 0x29b   : > { %v1490_v61 = vadd.f32 %v1489_v60, %v779_v57  ;;  %v1491_v62 = vpop.f32.mrb[6].mxu1 }
 0x29c   : > { %1541 = vst [vmem:[%s2706_s22 + $0x20] sm:$0xff] %v1488_v59  ;;  %v1492_v63 = vadd.f32 %v1491_v62, %v775_v56  ;;  %v1493_v0 = vpop.f32.mrb[7].mxu1 }
 0x29d   : > { %1542 = vst [vmem:[%s2706_s22 + $0x28] sm:$0xff] %v1490_v61  ;;  %v1494_v2 = vadd.f32 %v1493_v0, %v779_v57 }
 0x29e   : > { %1549 = vst [vmem:[%s2706_s22 + $0x58] sm:$0xff] %v1492_v63 }
 0x29f   : > { %1550 = vst [vmem:[%s2706_s22 + $0x60] sm:$0xff] %v1494_v2 }
 0x2a0   : > { %2075 = shalt.err (!%p2072_p3)
}
 0x2a1   : > { %s2076_s18 = scalar_lea.hbm %s2727_s14, 1792  ;;  %s2080_s21 = scalar_lea.hbm %s2784_s7, 3584 }
 0x2a2   : > { %p2077_p4 = scmp.ne.s32.totalorder %s2727_s14, %s2076_s18  ;;  %p2081_p9 = scmp.lt.u32.totalorder %s2727_s14, %s2784_s7 }
 0x2a3   : > { %p2082_p10 = scmp.lt.u32.totalorder %s2080_s21, %s2076_s18  ;;  %p2084_p12 = scmp.lt.u32.totalorder %s2076_s18, %s2727_s14 }
 0x2a4   : > { %p2078_p7 = pnand %p2077_p4, %p2209_p5 }
 0x2a5   : > { %p2083_p11 = por %p2082_p10, %p2081_p9 }
 0x2a6   : > { %p2079_p8 = pneg %p2078_p7 }
 0x2a7   : > { %p2085_p13 = por %p2084_p12, %p2083_p11 }
 0x2a9   : > { %p2086_p0 = pnand %p2085_p13, %p2079_p8 }
 0x2ab   : > { %2089 = shalt.err (!%p2086_p0)
}
 0x2ac   : > { %s2129_s8 = smov 896   ;;  %s2130_s9 = smov 56  }
 0x2ad   : > { %1808 = dma.vmem_to_hbm [thread:$0]  (%p2209_p5), %s2729_s29, 1792, %s2727_s14, %s2736_s28, %s2129_s8, %s2129_s8, %s2130_s9  }
 0x2ae PF: > { %p1814_p1 = scmp.ge.s32.totalorder %s2124_s27, 2  ;;  %s1582_s15 = sand.u32 1, %s2112_s24  }
 0x2af   : > { %s1583_s13 = scalar_lea.sflag [#allocation3], %s1582_s15 }
 0x2b0   : > { %p1811_p2 = pnand %p1814_p1, %p2213_p6 }
 0x2b2   : > { %2107 = dma.done.wait (!%p1811_p2), %s1583_s13, 1792  }
 0x2b3   : > { %2109 = vsyncadd (!%p1811_p2), %s1583_s13, 4294965504  ;;  %p17_p3 = scmp.ge.s32.totalorder %s2196_s30, 4   ;;  %s2787_s24 = smov %s2116_s25 }
 0x2b4   : > { %s2788_s25 = smov %s2120_s26  ;;  %s2789_s26 = smov %s2207_s10 }
 0x2b5   : > { %s2790_s27 = smov %s2196_s30  ;;  %19 = sbr.rel (!%p17_p3) target bundleno = 3 (0x3), region = 83 }
 0x2bc   :  { %1588 = vsyncpa [#allocation3], 1 }
 0x2bd   :  { %1590 = vsyncpa [#allocation3 + $0x1], 1 }

</bundles_post_ra>
